<compile_context>
chip_gen: v7x
topology: tpu7x:2x2x1
jax: 0.10.0
libtpu: 0.0.40
codegen_flags: <defaults>
</compile_context>

<pallas_src>
import math
from typing import NamedTuple

import jax
import jax.numpy as jnp
from jax import lax
from jax.experimental import pallas as pl
from jax.experimental.pallas import tpu as pltpu


def _gelu_exact(x):
    # Matches torch.nn.GELU() default (exact, erf-based).  Runs in f32.
    # TODO(synk): if the bundle shows the VALU slot saturating on the erf polynomial,
    # switch to tanh-GELU (EUP) -- slightly different numerics than torch's exact GELU.
    return 0.5 * x * (1.0 + lax.erf(x * (1.0 / math.sqrt(2.0))))


def weight_mlp_kernel(x_ref, w1_ref, b1_ref, w2_ref, b2_ref, w3_ref, b3_ref, o_ref):
    # Weights arrive pre-transposed to (in_features, out_features), so every matmul is a
    # standard (((1,),(0,)),((),())) contraction feeding the MXU with no transpose.
    x = x_ref[...]

    h = jnp.dot(x, w1_ref[...], preferred_element_type=jnp.float32)
    h = _gelu_exact(h + b1_ref[...])                       # bias add + GELU in f32

    h = jnp.dot(h.astype(w2_ref.dtype), w2_ref[...], preferred_element_type=jnp.float32)
    h = _gelu_exact(h + b2_ref[...])

    out = jnp.dot(h.astype(w3_ref.dtype), w3_ref[...], preferred_element_type=jnp.float32)
    o_ref[...] = (out + b3_ref[...]).astype(o_ref.dtype)   # lane-dense (tm, d_out_p) store


def _round_up(x, m):
    return (x + m - 1) // m * m


def _pad_axis(a, axis, new_size):
    pad = new_size - a.shape[axis]
    if pad == 0:
        return a
    widths = [(0, 0)] * a.ndim
    widths[axis] = (0, pad)
    return jnp.pad(a, widths)


class PreparedWeightMLP(NamedTuple):
    w1: jax.Array      # (d_in, h1p)    compute dtype
    b1: jax.Array      # (1, h1p)       f32
    w2: jax.Array      # (h1p, h2p)     compute dtype
    b2: jax.Array      # (1, h2p)       f32
    w3: jax.Array      # (h2p, d_out_p) compute dtype
    b3: jax.Array      # (1, d_out_p)   f32
    d_out: int         # unpadded output dim


def prepare_weight_mlp_params(params, *, compute_dtype=jnp.bfloat16, lane_multiple=128):
    """One-time parameter prep (hoisted out of the per-call hot path).

    params: list of (W, b) with W shaped (out_features, in_features), as in torch.nn.Linear.
    - Transposes W to (in_features, out_features) so the kernel never transposes.
    - Zero-pads every produced feature dim to a multiple of `lane_multiple` (gelu(0)==0,
      so padding is exact).  Use lane_multiple=256 on v6e/v7x when hidden dims exceed 128
      to fill the 256-wide MXU result tile; 128 is optimal on v5e and for these toy dims.
    - Casts matmul inputs to compute_dtype (bf16 default: the MXU is bf16-native on all
      generations; accumulation stays f32).  compute_dtype=None keeps strict f32.
    Biases stay f32 (bias add + GELU always run in f32 on the VPU/EUP).
    """
    (w1, b1), (w2, b2), (w3, b3) = params
    h1, h2, d_out = w1.shape[0], w2.shape[0], w3.shape[0]
    h1p, h2p, d_out_p = (_round_up(d, lane_multiple) for d in (h1, h2, d_out))

    w1t = _pad_axis(w1.T, 1, h1p)                              # (d_in, h1p)
    w2t = _pad_axis(_pad_axis(w2.T, 0, h1p), 1, h2p)           # (h1p, h2p)
    w3t = _pad_axis(_pad_axis(w3.T, 0, h2p), 1, d_out_p)       # (h2p, d_out_p)
    if compute_dtype is not None:
        w1t, w2t, w3t = (w.astype(compute_dtype) for w in (w1t, w2t, w3t))

    b1p = _pad_axis(b1.astype(jnp.float32), 0, h1p)[None, :]
    b2p = _pad_axis(b2.astype(jnp.float32), 0, h2p)[None, :]
    b3p = _pad_axis(b3.astype(jnp.float32), 0, d_out_p)[None, :]
    return PreparedWeightMLP(w1t, b1p, w2t, b2p, w3t, b3p, d_out)


def _pick_tm(B, sublane):
    # Fill the MXU M dimension and amortize the ~0.35us per-grid-step overhead, but cap
    # the tile so large batches get >= 2 grid steps: dimension_semantics=("parallel",)
    # can then shard the batch axis across v7x's two TensorCores.
    half = _round_up(pl.cdiv(B, 2), sublane)
    return min(_round_up(B, sublane), max(256, half), 512)


def weight_mlp(x, prepared: PreparedWeightMLP, *, tm=None):
    """x: (B, input_dim).  prepared: output of prepare_weight_mlp_params()."""
    B, d_in = x.shape
    out_dtype = x.dtype
    compute_dtype = prepared.w1.dtype
    d_out_p = prepared.w3.shape[1]
    assert prepared.w1.shape[0] == d_in, "input_dim mismatch vs prepared params"

    # bf16 packs 16 rows per sublane group; round the batch tile accordingly.
    sublane = 16 if jnp.dtype(compute_dtype).itemsize == 2 else 8
    if tm is None:
        tm = _pick_tm(B, sublane)
    Bp = tm * pl.cdiv(B, tm)
    xp = _pad_axis(x, 0, Bp).astype(compute_dtype)
    # TODO(synk): optionally zero-pad d_in (and w1's rows, in the prep step) up to 128 so
    # the first matmul's operands are fully lane-dense when input_dim is small.

    # Grid-invariant weights/biases: whole-array VMEM residency (single copy, no dead
    # double-buffer).  Only the x tile and the output tile are pipelined over the grid.
    resident = pl.BlockSpec(memory_space=pltpu.MemorySpace.VMEM)

    out = pl.pallas_call(
        weight_mlp_kernel,
        out_shape=jax.ShapeDtypeStruct((Bp, d_out_p), out_dtype),
        grid=(Bp // tm,),
        in_specs=[
            pl.BlockSpec((tm, d_in), lambda i: (i, 0)),        # x tile over batch
            resident, resident,                                # layer 1 (w1, b1)
            resident, resident,                                # layer 2 (w2, b2)
            resident, resident,                                # output layer (w3, b3)
        ],
        out_specs=pl.BlockSpec((tm, d_out_p), lambda i: (i, 0)),
        compiler_params=pltpu.CompilerParams(
            dimension_semantics=("parallel",),                 # megacore-shardable batch axis
        ),
    )(xp, prepared.w1, prepared.b1, prepared.w2, prepared.b2, prepared.w3, prepared.b3)

    return out[:B, :prepared.d_out]


def init_linear(key, in_features, out_features):
    # Deterministic init mirroring torch.nn.Linear's shapes:
    # W: (out_features, in_features), b: (out_features,)
    kw, kb = jax.random.split(key)
    bound = 1.0 / math.sqrt(in_features)
    w = jax.random.uniform(kw, (out_features, in_features), jnp.float32, -bound, bound)
    b = jax.random.uniform(kb, (out_features,), jnp.float32, -bound, bound)
    return w, b


def reference_mlp(x, params):
    # Pure-JAX reference of the PyTorch forward for the correctness check.
    (w1, b1), (w2, b2), (w3, b3) = params
    h = _gelu_exact(x @ w1.T + b1)
    h = _gelu_exact(h @ w2.T + b2)
    return h @ w3.T + b3


if __name__ == "__main__":
    # Weight_MLP(input_dim=32, hidden_dims=[64, 64], output_dim=16), dropout=0.0 (inactive).
    input_dim, hidden_dims, output_dim = 32, [64, 64], 16
    batch = 16

    key = jax.random.PRNGKey(0)
    kx, k1, k2, k3 = jax.random.split(key, 4)

    x = jax.random.normal(kx, (batch, input_dim), jnp.float32)
    params = [
        init_linear(k1, input_dim, hidden_dims[0]),
        init_linear(k2, hidden_dims[0], hidden_dims[1]),
        init_linear(k3, hidden_dims[1], output_dim),
    ]
    ref = reference_mlp(x, params)

    # Strict-f32 path (compute_dtype=None): tight tolerance.
    prepared_f32 = prepare_weight_mlp_params(params, compute_dtype=None)
    out_f32 = jax.block_until_ready(weight_mlp(x, prepared_f32))
    assert out_f32.shape == (batch, output_dim)
    assert jnp.allclose(out_f32, ref, atol=1e-4, rtol=1e-4), "f32 mismatch vs reference"

    # Ragged batch (not a multiple of the tile) exercises the cdiv + row-padding path.
    out_odd = jax.block_until_ready(weight_mlp(x[:10], prepared_f32))
    assert out_odd.shape == (10, output_dim)
    assert jnp.allclose(out_odd, ref[:10], atol=1e-4, rtol=1e-4), "ragged-batch mismatch"

    # Default path: bf16 MXU inputs, f32 accumulation (fast path on v5e/v6e/v7x).
    prepared_bf16 = prepare_weight_mlp_params(params)       # compute_dtype=jnp.bfloat16
    out_bf16 = jax.block_until_ready(weight_mlp(x, prepared_bf16))
    assert out_bf16.shape == (batch, output_dim)
    assert jnp.allclose(out_bf16, ref, atol=5e-2, rtol=5e-2), "bf16 mismatch vs reference"

    print("KERNEL_OK")
</pallas_src>

<mosaic_0001>
module attributes {stable_mosaic.version = 11 : i64} {
  func.func @weight_mlp_kernel(%arg0: i32, %arg1: memref<16x32xf32, #tpu.memory_space<vmem>>, %arg2: memref<32x128xf32, #tpu.memory_space<vmem>>, %arg3: memref<1x128xf32, #tpu.memory_space<vmem>>, %arg4: memref<128x128xf32, #tpu.memory_space<vmem>>, %arg5: memref<1x128xf32, #tpu.memory_space<vmem>>, %arg6: memref<128x128xf32, #tpu.memory_space<vmem>>, %arg7: memref<1x128xf32, #tpu.memory_space<vmem>>, %arg8: memref<16x128xf32, #tpu.memory_space<vmem>>) attributes {dimension_semantics = [#tpu.dimension_semantics<parallel>], iteration_bounds = array<i64: 1>, scalar_prefetch = 0 : i64, scratch_operands = 0 : i64, tpu.core_type = #tpu.core_type<tc>, window_params = [{transform_indices = @transform_0, window_bounds = array<i64: 16, 32>}, {pipeline_mode = #tpu.pipeline_mode<synchronous>, transform_indices = @transform_1, window_bounds = array<i64: 32, 128>}, {pipeline_mode = #tpu.pipeline_mode<synchronous>, transform_indices = @transform_2, window_bounds = array<i64: 1, 128>}, {pipeline_mode = #tpu.pipeline_mode<synchronous>, transform_indices = @transform_3, window_bounds = array<i64: 128, 128>}, {pipeline_mode = #tpu.pipeline_mode<synchronous>, transform_indices = @transform_4, window_bounds = array<i64: 1, 128>}, {pipeline_mode = #tpu.pipeline_mode<synchronous>, transform_indices = @transform_5, window_bounds = array<i64: 128, 128>}, {pipeline_mode = #tpu.pipeline_mode<synchronous>, transform_indices = @transform_6, window_bounds = array<i64: 1, 128>}, {transform_indices = @transform_7, window_bounds = array<i64: 16, 128>}]} {
    %c0 = arith.constant 0 : index
    %c0_0 = arith.constant 0 : index
    %0 = vector.load %arg1[%c0, %c0_0] : memref<16x32xf32, #tpu.memory_space<vmem>>, vector<16x32xf32>
    %c0_1 = arith.constant 0 : index
    %c0_2 = arith.constant 0 : index
    %1 = vector.load %arg2[%c0_1, %c0_2] : memref<32x128xf32, #tpu.memory_space<vmem>>, vector<32x128xf32>
    %cst = arith.constant dense<0.000000e+00> : vector<16x128xf32>
    %2 = tpu.matmul %0, %1, %cst {dimension_numbers = #tpu.dot_dimension_numbers<[1], [0], [0], [1], [0, 0, 1, 1], [], []>} : vector<16x32xf32>, vector<32x128xf32>, vector<16x128xf32> -> vector<16x128xf32>
    %c0_3 = arith.constant 0 : index
    %c0_4 = arith.constant 0 : index
    %3 = vector.load %arg3[%c0_3, %c0_4] : memref<1x128xf32, #tpu.memory_space<vmem>>, vector<1x128xf32>
    %4 = vector.broadcast %3 : vector<1x128xf32> to vector<16x128xf32>
    %5 = arith.addf %2, %4 : vector<16x128xf32>
    %cst_5 = arith.constant 5.000000e-01 : f32
    %6 = vector.broadcast %cst_5 : f32 to vector<16x128xf32>
    %7 = arith.mulf %6, %5 : vector<16x128xf32>
    %cst_6 = arith.constant 0.707106769 : f32
    %8 = vector.broadcast %cst_6 : f32 to vector<16x128xf32>
    %9 = arith.mulf %5, %8 : vector<16x128xf32>
    %10 = math.erf %9 : vector<16x128xf32>
    %cst_7 = arith.constant 1.000000e+00 : f32
    %11 = vector.broadcast %cst_7 : f32 to vector<16x128xf32>
    %12 = arith.addf %11, %10 : vector<16x128xf32>
    %13 = arith.mulf %7, %12 : vector<16x128xf32>
    %c0_8 = arith.constant 0 : index
    %c0_9 = arith.constant 0 : index
    %14 = vector.load %arg4[%c0_8, %c0_9] : memref<128x128xf32, #tpu.memory_space<vmem>>, vector<128x128xf32>
    %cst_10 = arith.constant dense<0.000000e+00> : vector<16x128xf32>
    %15 = tpu.matmul %13, %14, %cst_10 {dimension_numbers = #tpu.dot_dimension_numbers<[1], [0], [0], [1], [0, 0, 1, 1], [], []>} : vector<16x128xf32>, vector<128x128xf32>, vector<16x128xf32> -> vector<16x128xf32>
    %c0_11 = arith.constant 0 : index
    %c0_12 = arith.constant 0 : index
    %16 = vector.load %arg5[%c0_11, %c0_12] : memref<1x128xf32, #tpu.memory_space<vmem>>, vector<1x128xf32>
    %17 = vector.broadcast %16 : vector<1x128xf32> to vector<16x128xf32>
    %18 = arith.addf %15, %17 : vector<16x128xf32>
    %cst_13 = arith.constant 5.000000e-01 : f32
    %19 = vector.broadcast %cst_13 : f32 to vector<16x128xf32>
    %20 = arith.mulf %19, %18 : vector<16x128xf32>
    %cst_14 = arith.constant 0.707106769 : f32
    %21 = vector.broadcast %cst_14 : f32 to vector<16x128xf32>
    %22 = arith.mulf %18, %21 : vector<16x128xf32>
    %23 = math.erf %22 : vector<16x128xf32>
    %cst_15 = arith.constant 1.000000e+00 : f32
    %24 = vector.broadcast %cst_15 : f32 to vector<16x128xf32>
    %25 = arith.addf %24, %23 : vector<16x128xf32>
    %26 = arith.mulf %20, %25 : vector<16x128xf32>
    %c0_16 = arith.constant 0 : index
    %c0_17 = arith.constant 0 : index
    %27 = vector.load %arg6[%c0_16, %c0_17] : memref<128x128xf32, #tpu.memory_space<vmem>>, vector<128x128xf32>
    %cst_18 = arith.constant dense<0.000000e+00> : vector<16x128xf32>
    %28 = tpu.matmul %26, %27, %cst_18 {dimension_numbers = #tpu.dot_dimension_numbers<[1], [0], [0], [1], [0, 0, 1, 1], [], []>} : vector<16x128xf32>, vector<128x128xf32>, vector<16x128xf32> -> vector<16x128xf32>
    %c0_19 = arith.constant 0 : index
    %c0_20 = arith.constant 0 : index
    %29 = vector.load %arg7[%c0_19, %c0_20] : memref<1x128xf32, #tpu.memory_space<vmem>>, vector<1x128xf32>
    %30 = vector.broadcast %29 : vector<1x128xf32> to vector<16x128xf32>
    %31 = arith.addf %28, %30 : vector<16x128xf32>
    %c0_21 = arith.constant 0 : index
    %c0_22 = arith.constant 0 : index
    %32 = vector.load %arg8[%c0_21, %c0_22] : memref<16x128xf32, #tpu.memory_space<vmem>>, vector<16x128xf32>
    tpu.vector_store %arg8[%c0_21, %c0_22], %31 {strides = array<i32>} : memref<16x128xf32, #tpu.memory_space<vmem>>, vector<16x128xf32>,
    return
  }
  func.func @transform_0(%arg0: i32) -> (i32, i32) {
    %c0_i32 = arith.constant 0 : i32
    %c0_i32_0 = arith.constant 0 : i32
    return %arg0, %c0_i32 : i32, i32
  }
  func.func @transform_1(%arg0: i32) -> (i32, i32) {
    %c0_i32 = arith.constant 0 : i32
    %c0_i32_0 = arith.constant 0 : i32
    %c0_i32_1 = arith.constant 0 : i32
    return %c0_i32, %c0_i32_0 : i32, i32
  }
  func.func @transform_2(%arg0: i32) -> (i32, i32) {
    %c0_i32 = arith.constant 0 : i32
    %c0_i32_0 = arith.constant 0 : i32
    %c0_i32_1 = arith.constant 0 : i32
    return %c0_i32, %c0_i32_0 : i32, i32
  }
  func.func @transform_3(%arg0: i32) -> (i32, i32) {
    %c0_i32 = arith.constant 0 : i32
    %c0_i32_0 = arith.constant 0 : i32
    %c0_i32_1 = arith.constant 0 : i32
    return %c0_i32, %c0_i32_0 : i32, i32
  }
  func.func @transform_4(%arg0: i32) -> (i32, i32) {
    %c0_i32 = arith.constant 0 : i32
    %c0_i32_0 = arith.constant 0 : i32
    %c0_i32_1 = arith.constant 0 : i32
    return %c0_i32, %c0_i32_0 : i32, i32
  }
  func.func @transform_5(%arg0: i32) -> (i32, i32) {
    %c0_i32 = arith.constant 0 : i32
    %c0_i32_0 = arith.constant 0 : i32
    %c0_i32_1 = arith.constant 0 : i32
    return %c0_i32, %c0_i32_0 : i32, i32
  }
  func.func @transform_6(%arg0: i32) -> (i32, i32) {
    %c0_i32 = arith.constant 0 : i32
    %c0_i32_0 = arith.constant 0 : i32
    %c0_i32_1 = arith.constant 0 : i32
    return %c0_i32, %c0_i32_0 : i32, i32
  }
  func.func @transform_7(%arg0: i32) -> (i32, i32) {
    %c0_i32 = arith.constant 0 : i32
    %c0_i32_0 = arith.constant 0 : i32
    return %arg0, %c0_i32 : i32, i32
  }
}

</mosaic_0001>

<bundles_post_ra>
// kernel: tpu_custom_call.1
= control target key start
LH: loop header
LB: loop body
LE: loop exit
PB: predicated region body
PF: predicated region fallthrough
CT: control target
= control target key end

     0   :  { %12 = vsyncpa [#allocation3], 0  ;;  %s894_s0 = inlined_call_operand.hbm [shape: f32[16,32], index: 0, kind: input, shape index: {}]   ;;  %s895_s1 = inlined_call_operand.hbm [shape: f32[32,128], index: 1, kind: input, shape index: {}]   ;;  %s896_s2 = inlined_call_operand.vmem [shape: f32[1,128], index: 2, kind: input, shape index: {}]   ;;  %s897_s3 = inlined_call_operand.hbm [shape: f32[128,128], index: 3, kind: input, shape index: {}]   ;;  %s898_s4 = inlined_call_operand.vmem [shape: f32[1,128], index: 4, kind: input, shape index: {}]   ;;  %s899_s5 = inlined_call_operand.hbm [shape: f32[128,128], index: 5, kind: input, shape index: {}]   ;;  %s900_s6 = inlined_call_operand.vmem [shape: f32[1,128], index: 6, kind: input, shape index: {}]   ;;  %s901_s7 = inlined_call_operand.hbm [shape: f32[16,128], index: 7, kind: output, shape index: {}]  }
   0x1   :  { %13 = vsyncpa [#allocation6], 0 }
   0x2   :  { %14 = vsyncpa [#allocation9], 0 }
   0x3   :  { %15 = vsyncpa [#allocation4], 0  ;;  %s747_s24 = smov [#allocation5]   ;;  %s748_s26 = smov [#allocation2]  }
   0x4   :  { %s33_s25 = sshll.u32 %s747_s24, 4  ;;  %s21_s27 = sshll.u32 %s748_s26, 4  ;;  %s34_s25 = int_to_ptr.vmem [resolvable:$true] %s33_s25  ;;  %s794_s27 = int_to_ptr.vmem [resolvable:$true] %s21_s27 }
   0x5   :  { %s629_s30 = scalar_lea.hbm %s895_s1, 512 }
   0x6   :  { %p630_p0 = scmp.ne.s32.totalorder %s895_s1, %s629_s30  ;;  %p633_p1 = scmp.lt.u32.totalorder %s629_s30, %s895_s1 }
   0x8   :  { %p635_p2 = pnand %p633_p1, %p630_p0 }
   0xa   :  { %638 = shalt.err (!%p635_p2)
}
   0xb   :  { %s639_s12 = scalar_lea.vmem %s34_s25, 512  ;;  %p644_p4 = scmp.lt.s32.totalorder %s34_s25, %s34_s25 }
   0xc   :  { %p640_p3 = scmp.ne.s32.totalorder %s34_s25, %s639_s12  ;;  %p645_p5 = scmp.lt.s32.totalorder %s639_s12, %s639_s12 }
   0xe   :  { %p646_p6 = por %p645_p5, %p644_p4 }
  0x10   :  { %p647_p7 = pnand %p646_p6, %p640_p3 }
  0x12   :  { %650 = shalt.err (!%p647_p7)
}
  0x13   :  { %s749_s13 = smov 128   ;;  %s750_s14 = smov 8  }
  0x14   :  { %39 = dma.hbm_to_vmem [thread:$0]  %s895_s1, 512, %s34_s25, [#allocation6], %s749_s13, %s749_s13, %s750_s14  }
  0x15   :  { %s651_s19 = scalar_lea.hbm %s894_s0, 256 }
  0x16   :  { %p652_p8 = scmp.ne.s32.totalorder %s894_s0, %s651_s19  ;;  %p655_p9 = scmp.lt.u32.totalorder %s651_s19, %s894_s0 }
  0x18   :  { %p657_p10 = pnand %p655_p9, %p652_p8 }
  0x1a   :  { %660 = shalt.err (!%p657_p10)
}
  0x1b   :  { %s661_s24 = scalar_lea.vmem %s794_s27, 256  ;;  %p666_p12 = scmp.lt.s32.totalorder %s794_s27, %s794_s27 }
  0x1c   :  { %p662_p11 = scmp.ne.s32.totalorder %s794_s27, %s661_s24  ;;  %p667_p13 = scmp.lt.s32.totalorder %s661_s24, %s661_s24 }
  0x1e   :  { %p668_p0 = por %p667_p13, %p666_p12 }
  0x20   :  { %p669_p1 = pnand %p668_p0, %p662_p11 }
  0x22   :  { %672 = shalt.err (!%p669_p1)
}
  0x23   :  { %27 = dma.hbm_to_vmem [thread:$0]  %s894_s0, 256, %s794_s27, [#allocation3], %s749_s13, %s749_s13, %s750_s14  }
  0x24   :  { %s751_s26 = smov [#allocation7]   ;;  %s752_s29 = smov [#allocation8]  }
  0x25   :  { %s47_s28 = sshll.u32 %s751_s26, 4  ;;  %s61_s30 = sshll.u32 %s752_s29, 4  ;;  %s48_s28 = int_to_ptr.vmem [resolvable:$true] %s47_s28  ;;  %s831_s30 = int_to_ptr.vmem [resolvable:$true] %s61_s30 }
  0x26   :  { %s673_s10 = scalar_lea.hbm %s897_s3, 2048 }
  0x27   :  { %p674_p2 = scmp.ne.s32.totalorder %s897_s3, %s673_s10  ;;  %p677_p3 = scmp.lt.u32.totalorder %s673_s10, %s897_s3 }
  0x29   :  { %p679_p4 = pnand %p677_p3, %p674_p2 }
  0x2b   :  { %682 = shalt.err (!%p679_p4)
}
  0x2c   :  { %s683_s0 = scalar_lea.vmem %s48_s28, 2048  ;;  %p688_p6 = scmp.lt.s32.totalorder %s48_s28, %s48_s28 }
  0x2d   :  { %p684_p5 = scmp.ne.s32.totalorder %s48_s28, %s683_s0  ;;  %p689_p7 = scmp.lt.s32.totalorder %s683_s0, %s683_s0 }
  0x2f   :  { %p690_p8 = por %p689_p7, %p688_p6 }
  0x31   :  { %p691_p9 = pnand %p690_p8, %p684_p5 }
  0x33   :  { %694 = shalt.err (!%p691_p9)
}
  0x34   :  { %53 = dma.hbm_to_vmem [thread:$0]  %s897_s3, 2048, %s48_s28, [#allocation6], %s749_s13, %s749_s13, %s750_s14  }
  0x35   :  { %s695_s20 = scalar_lea.hbm %s899_s5, 2048 }
  0x36   :  { %p696_p10 = scmp.ne.s32.totalorder %s899_s5, %s695_s20  ;;  %p699_p11 = scmp.lt.u32.totalorder %s695_s20, %s899_s5 }
  0x38   :  { %p701_p12 = pnand %p699_p11, %p696_p10 }
  0x3a   :  { %704 = shalt.err (!%p701_p12)
}
  0x3b   :  { %s705_s1 = scalar_lea.vmem %s831_s30, 2048  ;;  %p710_p0 = scmp.lt.s32.totalorder %s831_s30, %s831_s30 }
  0x3c   :  { %p706_p13 = scmp.ne.s32.totalorder %s831_s30, %s705_s1  ;;  %p711_p1 = scmp.lt.s32.totalorder %s705_s1, %s705_s1 }
  0x3e   :  { %p712_p2 = por %p711_p1, %p710_p0 }
  0x40   :  { %p713_p3 = pnand %p712_p2, %p706_p13 }
  0x42   :  { %716 = shalt.err (!%p713_p3)
}
  0x43   :  { %67 = dma.hbm_to_vmem [thread:$0]  %s899_s5, 2048, %s831_s30, [#allocation9], %s749_s13, %s749_s13, %s750_s14  }
  0x44   :  { %739 = dma.done.wait [#allocation3], 256  }
  0x45   :  { %740 = vsyncadd [#allocation3], 4294967040 }
  0x46   :  { %741 = dma.done.wait [#allocation6], 2560  }
  0x47   :  { %742 = vsyncadd [#allocation6], 4294964736 }
  0x48   :  { %743 = dma.done.wait [#allocation9], 2048  }
  0x49   :  { %744 = vsyncadd [#allocation9], 4294965248  ;;  %vm95_vm0 = vcmask 261120   ;;  %v84_v0 = vld [vmem:[#allocation5] sm:$0xff]  ;;  %v85_v1 = vld [vmem:[#allocation5 + $0x8] sm:$0xff]  ;;  %s753_s30 = smov [#allocation10]  }
  0x4a   :  { %v86_v2 = vld [vmem:[#allocation5 + $0x10] sm:$0xff]  ;;  %v542_v3 = vpack.c.bf16 %v85_v1, %v84_v0  ;;  %v87_v4 = vld [vmem:[#allocation5 + $0x18] sm:$0xff]  ;;  %v187_v7 = vld [vmem:[#allocation7] sm:$0xff]  ;;  %s400_s8 = sshll.u32 %s753_s30, 4  ;;  %s401_s8 = int_to_ptr.vmem [resolvable:$true] %s400_s8 }
  0x4b   :  { %v82_v5 = vld [vmem:[#allocation2] sm:$0xff]  ;;  %v546_v6 = vpack.c.bf16 %v87_v4, %v86_v2  ;;  %v188_v8 = vld [vmem:[#allocation7 + $0x8] sm:$0xff]  ;;  %v190_v11 = vld [vmem:[#allocation7 + $0x18] sm:$0xff]  ;;  %s717_s9 = scalar_lea.vmem %s401_s8, 256  ;;  %p722_p5 = scmp.lt.s32.totalorder %s401_s8, %s401_s8 }
  0x4c   :  { %469 = vmatprep.mubr.msk.f32.mxu0 %vm95_vm0, %v82_v5  ;;  %v189_v9 = vld [vmem:[#allocation7 + $0x10] sm:$0xff]  ;;  %543 = vmatprep.subr.bf16.mxu0 %v542_v3  ;;  %v550_v10 = vpack.c.bf16 %v188_v8, %v187_v7  ;;  %v191_v13 = vld [vmem:[#allocation7 + $0x20] sm:$0xff]  ;;  %v192_v14 = vld [vmem:[#allocation7 + $0x28] sm:$0xff]  ;;  %p718_p4 = scmp.ne.s32.totalorder %s401_s8, %s717_s9  ;;  %p723_p6 = scmp.lt.s32.totalorder %s717_s9, %s717_s9 }
  0x4d   :  { %545 = vmatpush3.bf16.msra.mxu0 %v542_v3  ;;  %v554_v12 = vpack.c.bf16 %v190_v11, %v189_v9  ;;  %v558_v15 = vpack.c.bf16 %v192_v14, %v191_v13  ;;  %v83_v16 = vld [vmem:[#allocation2 + $0x8] sm:$0xff]  ;;  %v193_v17 = vld [vmem:[#allocation7 + $0x30] sm:$0xff]  ;;  %v195_v20 = vld [vmem:[#allocation7 + $0x40] sm:$0xff] }
  0x4e   :  { %547 = vmatprep.subr.bf16.mxu0 %v546_v6  ;;  %551 = vmatprep.subr.bf16.mxu1 %v550_v10  ;;  %v194_v18 = vld [vmem:[#allocation7 + $0x38] sm:$0xff]  ;;  %v196_v21 = vld [vmem:[#allocation7 + $0x48] sm:$0xff]  ;;  %v197_v23 = vld [vmem:[#allocation7 + $0x50] sm:$0xff]  ;;  %p724_p7 = por %p723_p6, %p722_p5 }
  0x4f   :  { %553 = vmatpush3.bf16.msra.mxu1 %v550_v10  ;;  %v562_v19 = vpack.c.bf16 %v194_v18, %v193_v17  ;;  %v566_v22 = vpack.c.bf16 %v196_v21, %v195_v20  ;;  %v198_v24 = vld [vmem:[#allocation7 + $0x58] sm:$0xff]  ;;  %v199_v26 = vld [vmem:[#allocation7 + $0x60] sm:$0xff]  ;;  %v200_v27 = vld [vmem:[#allocation7 + $0x68] sm:$0xff] }
  0x50   :  { %555 = vmatprep.subr.bf16.mxu1 %v554_v12  ;;  %v570_v25 = vpack.c.bf16 %v198_v24, %v197_v23  ;;  %v574_v28 = vpack.c.bf16 %v200_v27, %v199_v26  ;;  %v201_v29 = vld [vmem:[#allocation7 + $0x70] sm:$0xff]  ;;  %v202_v30 = vld [vmem:[#allocation7 + $0x78] sm:$0xff]  ;;  %v295_v32 = vld [vmem:[#allocation8] sm:$0xff]  ;;  %p725_p8 = pnand %p724_p7, %p718_p4 }
  0x51   :  { %549 = vmatpush3.bf16.msra.mxu0 %v546_v6  ;;  %v578_v31 = vpack.c.bf16 %v202_v30, %v201_v29  ;;  %v296_v33 = vld [vmem:[#allocation8 + $0x8] sm:$0xff]  ;;  %v297_v34 = vld [vmem:[#allocation8 + $0x10] sm:$0xff]  ;;  %v298_v36 = vld [vmem:[#allocation8 + $0x18] sm:$0xff] }
  0x52   :  { %v582_v35 = vpack.c.bf16 %v296_v33, %v295_v32  ;;  %v586_v37 = vpack.c.bf16 %v298_v36, %v297_v34  ;;  %v299_v38 = vld [vmem:[#allocation8 + $0x20] sm:$0xff]  ;;  %v300_v39 = vld [vmem:[#allocation8 + $0x28] sm:$0xff]  ;;  %v414_v41 = vld [vmem:[%s896_s2] ss:$0 sm:$0xff] }
  0x53   :  { %557 = vmatpush3.bf16.msra.mxu1 %v554_v12  ;;  %v590_v40 = vpack.c.bf16 %v300_v39, %v299_v38  ;;  %v301_v56 = vld [vmem:[#allocation8 + $0x30] sm:$0xff]  ;;  %v302_v57 = vld [vmem:[#allocation8 + $0x38] sm:$0xff]  ;;  %v303_v59 = vld [vmem:[#allocation8 + $0x40] sm:$0xff] }
  0x54   :  { %470 = vmatmul.mubr.msk.f32.vlgmr.msra.gmra.mrb[0].mxu0 %vm95_vm0, %v83_v16  ;;  %559 = vmatprep.subr.bf16.mxu1 %v558_v15  ;;  %v594_v58 = vpack.c.bf16 %v302_v57, %v301_v56  ;;  %v304_v60 = vld [vmem:[#allocation8 + $0x48] sm:$0xff]  ;;  %v305_v62 = vld [vmem:[#allocation8 + $0x50] sm:$0xff]  ;;  %v306_v63 = vld [vmem:[#allocation8 + $0x58] sm:$0xff] }
  0x55   :  { %583 = vmatprep.subr.bf16.mxu0 %v582_v35  ;;  %v598_v61 = vpack.c.bf16 %v304_v60, %v303_v59  ;;  %v602_v0 = vpack.c.bf16 %v306_v63, %v305_v62  ;;  %v307_v1 = vld [vmem:[#allocation8 + $0x60] sm:$0xff]  ;;  %v308_v2 = vld [vmem:[#allocation8 + $0x68] sm:$0xff]  ;;  %v309_v4 = vld [vmem:[#allocation8 + $0x70] sm:$0xff] }
  0x56   :  { %585 = vmatpush3.bf16.msra.mxu0 %v582_v35  ;;  %v606_v3 = vpack.c.bf16 %v308_v2, %v307_v1  ;;  %v310_v5 = vld [vmem:[#allocation8 + $0x78] sm:$0xff]  ;;  %v417_v7 = vld [vmem:[%s898_s4] ss:$0 sm:$0xff] }
  0x57   :  { %561 = vmatpush3.bf16.msra.mxu1 %v558_v15  ;;  %587 = vmatprep.subr.bf16.mxu0 %v586_v37  ;;  %v610_v6 = vpack.c.bf16 %v310_v5, %v309_v4 }
  0x58   :  { %563 = vmatprep.subr.bf16.mxu1 %v562_v19 }
  0x5a   :  { %589 = vmatpush3.bf16.msra.mxu0 %v586_v37 }
  0x5b   :  { %565 = vmatpush3.bf16.msra.mxu1 %v562_v19  ;;  %591 = vmatprep.subr.bf16.mxu0 %v590_v40 }
  0x5c   :  { %567 = vmatprep.subr.bf16.mxu1 %v566_v22 }
  0x5e   :  { %593 = vmatpush3.bf16.msra.mxu0 %v590_v40 }
  0x5f   :  { %569 = vmatpush3.bf16.msra.mxu1 %v566_v22  ;;  %595 = vmatprep.subr.bf16.mxu0 %v594_v58  ;;  %v418_v22 = vld [vmem:[%s900_s6] ss:$0 sm:$0xff] }
  0x60   :  { %571 = vmatprep.subr.bf16.mxu1 %v570_v25 }
  0x62   :  { %597 = vmatpush3.bf16.msra.mxu0 %v594_v58 }
  0x63   :  { %573 = vmatpush3.bf16.msra.mxu1 %v570_v25  ;;  %599 = vmatprep.subr.bf16.mxu0 %v598_v61 }
  0x64   :  { %575 = vmatprep.subr.bf16.mxu1 %v574_v28 }
  0x66   :  { %601 = vmatpush3.bf16.msra.mxu0 %v598_v61 }
  0x67   :  { %577 = vmatpush3.bf16.msra.mxu1 %v574_v28  ;;  %603 = vmatprep.subr.bf16.mxu0 %v602_v0 }
  0x68   :  { %579 = vmatprep.subr.bf16.mxu1 %v578_v31 }
  0x6a   :  { %605 = vmatpush3.bf16.msra.mxu0 %v602_v0 }
  0x6b   :  { %581 = vmatpush3.bf16.msra.mxu1 %v578_v31  ;;  %607 = vmatprep.subr.bf16.mxu0 %v606_v3 }
  0x6e   :  { %609 = vmatpush3.bf16.msra.mxu0 %v606_v3 }
  0x6f   :  { %611 = vmatprep.subr.bf16.mxu0 %v610_v6 }
  0x72   :  { %613 = vmatpush3.bf16.msra.mxu0 %v610_v6 }
 0x127   :  { %v471_v42 = vpop.f32.mrb[0].mxu0 }
 0x128   :  { %v174_v43 = vadd.f32 %v471_v42, %v414_v41  ;;  %v168_v44 = vpop.f32.mrb[1].mxu0 }
 0x129   :  { %v169_v45 = vadd.f32 %v414_v41, %v168_v44 }
 0x12a   :  { %v180_v46 = vmul.f32 0.70710677, %v174_v43  ;;  %v178_v53 = vmul.f32 0.5, %v174_v43 }
 0x12b   :  { %v179_v47 = vmul.f32 0.70710677, %v169_v45  ;;  %v177_v51 = vmul.f32 0.5, %v169_v45 }
 0x12c   :  { %621 = verf.f32 %v180_v46 }
 0x12d   :  { %623 = verf.f32 %v179_v47 }
 0x136   :  { %v622_v48 = vpop.eup %621 }
 0x137   :  { %v624_v49 = vpop.eup %623  ;;  %v184_v50 = vadd.f32 1.0, %v622_v48 }
 0x138   :  { %v183_v52 = vadd.f32 1.0, %v624_v49 }
 0x139   :  { %v186_v55 = vmul.f32 %v184_v50, %v178_v53 }
 0x13a   :  { %v185_v54 = vmul.f32 %v183_v52, %v177_v51 }
 0x13c   :  { %504 = vmatprep.mubr.f32.mxu1 %v185_v54 }
 0x13d   :  { %505 = vmatmul.mubr.f32.vlgmr.msra.gmra.mrb[0].mxu1 %v186_v55 }
 0x210   :  { %v506_v8 = vpop.f32.mrb[0].mxu1 }
 0x211   :  { %v282_v9 = vadd.f32 %v506_v8, %v417_v7  ;;  %v276_v10 = vpop.f32.mrb[1].mxu1 }
 0x212   :  { %v277_v11 = vadd.f32 %v417_v7, %v276_v10 }
 0x213   :  { %v288_v12 = vmul.f32 0.70710677, %v282_v9  ;;  %v286_v19 = vmul.f32 0.5, %v282_v9 }
 0x214   :  { %v287_v13 = vmul.f32 0.70710677, %v277_v11  ;;  %v285_v17 = vmul.f32 0.5, %v277_v11 }
 0x215   :  { %625 = verf.f32 %v288_v12 }
 0x216   :  { %627 = verf.f32 %v287_v13 }
 0x21f   :  { %v626_v14 = vpop.eup %625 }
 0x220   :  { %v628_v15 = vpop.eup %627  ;;  %v292_v16 = vadd.f32 1.0, %v626_v14 }
 0x221   :  { %v291_v18 = vadd.f32 1.0, %v628_v15 }
 0x222   :  { %v294_v21 = vmul.f32 %v292_v16, %v286_v19 }
 0x223   :  { %v293_v20 = vmul.f32 %v291_v18, %v285_v17 }
 0x225   :  { %539 = vmatprep.mubr.f32.mxu0 %v293_v20 }
 0x226   :  { %540 = vmatmul.mubr.f32.vlgmr.msra.gmra.mrb[2].mxu0 %v294_v21 }
 0x2f9   :  { %v541_v23 = vpop.f32.mrb[2].mxu0 }
 0x2fa   :  { %v390_v24 = vadd.f32 %v541_v23, %v418_v22  ;;  %v384_v25 = vpop.f32.mrb[3].mxu0 }
 0x2fb   :  { %v385_v26 = vadd.f32 %v418_v22, %v384_v25 }
 0x2fc   :  { %394 = vst [vmem:[#allocation10 + $0x8] sm:$0xff] %v390_v24 }
 0x2fd   :  { %393 = vst [vmem:[#allocation10] sm:$0xff] %v385_v26 }
 0x2fe   :  { %728 = shalt.err (!%p725_p8)
}
 0x2ff   :  { %s729_s6 = scalar_lea.hbm %s901_s7, 256 }
 0x300   :  { %p730_p9 = scmp.ne.s32.totalorder %s901_s7, %s729_s6  ;;  %p733_p10 = scmp.lt.u32.totalorder %s729_s6, %s901_s7 }
 0x302   :  { %p735_p11 = pnand %p733_p10, %p730_p9 }
 0x304   :  { %738 = shalt.err (!%p735_p11)
}
 0x305   :  { %406 = dma.vmem_to_hbm [thread:$0]  %s401_s8, 256, %s901_s7, [#allocation4], %s749_s13, %s749_s13, %s750_s14  }
 0x306   :  { %745 = dma.done.wait [#allocation4], 256  }
 0x307   :  { %746 = vsyncadd [#allocation4], 4294967040 }
 0x308   :  { %410 = vsyncpa [#allocation3], 1 }
 0x309   :  { %411 = vsyncpa [#allocation6], 1 }
 0x30a   :  { %412 = vsyncpa [#allocation9], 1 }
 0x30b   :  { %413 = vsyncpa [#allocation4], 1 }

</bundles_post_ra>
